<compile_context>
chip_gen: v5e
topology: v5e:2x2
jax: 0.10.0
libtpu: 0.0.40
codegen_flags: <defaults>
</compile_context>

<pallas_src>
import functools

import jax
import jax.numpy as jnp
from jax.experimental import pallas as pl
from jax.experimental.pallas import tpu as pltpu


_HEADROOM_BYTES = 4 << 20  # output blocks / semaphores / Mosaic internal scratch
_N_LIVE_F32_INTERMEDIATES = 4  # t, s, t_exp, diff (peak concurrent full-tile f32)


def _vmem_budget_bytes():
    """(tile_budget, default_vmem_limit, hard_cap) in bytes for this TPU generation.

    tile_budget caps the pipelined + in-kernel-intermediate footprint of one
    (block_rows, cols) tile; default_vmem_limit goes to CompilerParams (raised
    to the real footprint if needed); hard_cap ~ usable physical VMEM per
    TensorCore, beyond which we fall back to plain XLA for that (rare) stage.
    """
    kind = ""
    try:
        kind = jax.devices()[0].device_kind.lower()
    except Exception:  # pragma: no cover - defensive
        pass
    if ("v5" in kind) or ("v6" in kind):
        # 128 MiB physical VMEM per TensorCore.
        return 64 << 20, 96 << 20, 112 << 20
    # v7x (64 MiB physical per TensorCore) or unknown generation: conservative.
    return 28 << 20, 44 << 20, 56 << 20


def _per_row_tile_bytes(cols, itemsize):
    # 2 inputs x 2 pipeline buffers at the input dtype, plus the peak number of
    # live full-tile f32 intermediates materialized inside the kernel.
    return 4 * cols * itemsize + _N_LIVE_F32_INTERMEDIATES * cols * 4


def _pick_block_rows(rows, cols, itemsize, tile_budget_bytes):
    """Largest row block that divides `rows`, is a multiple of 8 when possible,
    and keeps the full per-tile VMEM footprint within budget."""
    if rows % 8 != 0:
        # Irregular row count: single full-extent block (allowed because the
        # block equals the full array dim).  Caller checks it fits VMEM.
        return rows
    per_row = _per_row_tile_bytes(cols, itemsize)
    max_rows = max((tile_budget_bytes // per_row) // 8 * 8, 8)
    if max_rows >= rows:
        return rows
    # Largest divisor of `rows` that is a multiple of 8 and <= max_rows.
    best = 8
    d = 1
    while d * d <= rows:
        if rows % d == 0:
            for cand in (d, rows // d):
                if cand % 8 == 0 and cand <= max_rows and cand > best:
                    best = cand
        d += 1
    return best


def _cwd_kernel(s_ref, t_ref, out_ref, *, tau, scale):
    """One (block_rows, HW) tile of student/teacher logits -> scalar partial,
    broadcast-accumulated into this chunk's lane-dense (8, 128) output block."""
    j = pl.program_id(1)  # reduction ("arbitrary") axis within this chunk

    @pl.when(j == 0)
    def _():
        out_ref[...] = jnp.zeros_like(out_ref)

    t = t_ref[...].astype(jnp.float32)
    s = s_ref[...].astype(jnp.float32)
    if tau != 1.0:  # static Python check: at tau == 1.0 skip two full-tile ops
        inv_tau = jnp.float32(1.0 / tau)
        t = t * inv_tau  # multiply by 1/tau, never divide per element
        s = s * inv_tau

    # Numerically-stable softmax pieces over the spatial (lane) axis.
    t_max = jnp.max(t, axis=-1, keepdims=True)
    t_sh = t - t_max
    t_exp = jnp.exp(t_sh)
    t_sum = jnp.sum(t_exp, axis=-1, keepdims=True)

    s_max = jnp.max(s, axis=-1, keepdims=True)
    s_sh = s - s_max
    s_sum = jnp.sum(jnp.exp(s_sh), axis=-1, keepdims=True)

    # softmax_t * (log_softmax_t - log_softmax_s)
    #   = (t_exp / t_sum) * ((t_sh - s_sh) + (log s_sum - log t_sum))
    # -> two full-tile VPU ops + a tiny per-row approx reciprocal on the EUP.
    diff = (t_sh - s_sh) + (jnp.log(s_sum) - jnp.log(t_sum))
    row_num = jnp.sum(t_exp * diff, axis=-1, keepdims=True)   # (block_rows, 1)
    row_cost = row_num * pl.reciprocal(t_sum, approx=True)

    # scale = tau^2 / (C * N); the total is a plain sum, so scaling per block
    # (and summing chunk partials outside) is exact.  The scalar partial is
    # broadcast-added to the whole (8, 128) block -> unmasked vector stores;
    # the host reads element [0, 0] of each chunk block.
    out_ref[...] += jnp.sum(row_cost) * scale


def _cwd_stage_loss_xla(s2, t2, scale, tau):
    """Plain-XLA fallback for stages that cannot be tiled within VMEM."""
    t = t2.astype(jnp.float32) / tau
    s = s2.astype(jnp.float32) / tau
    sm_t = jax.nn.softmax(t, axis=1)
    cost = jnp.sum(sm_t * (jax.nn.log_softmax(t, axis=1)
                           - jax.nn.log_softmax(s, axis=1)))
    return cost * scale


def _cwd_stage_loss(s, t, tau, *, tile_budget_bytes=None, vmem_limit_bytes=None):
    """CWD loss for a single stage; s/t of shape (N, C, H, W)."""
    N, C, H, W = s.shape
    rows, cols = N * C, H * W
    scale = float(tau) ** 2 / (C * N)

    # Keep the incoming dtype (bf16 inputs halve the HBM->VMEM DMA bytes); the
    # kernel upcasts each tile to f32 internally.
    s2 = s.reshape(rows, cols)
    t2 = t.reshape(rows, cols)
    # TODO(synk): if H*W is not a multiple of 128 (e.g. 400 for 20x20 heads),
    # lane-pad the spatial axis with a large finite negative plus a mask on the
    # final product to recover the partial-lane waste of the full-extent block.

    tile_budget, vmem_limit, hard_cap = _vmem_budget_bytes()
    if tile_budget_bytes is not None:
        tile_budget = int(tile_budget_bytes)
    if vmem_limit_bytes is not None:
        vmem_limit = int(vmem_limit_bytes)

    itemsize = jnp.dtype(s2.dtype).itemsize
    block_rows = _pick_block_rows(rows, cols, itemsize, tile_budget)
    footprint = block_rows * _per_row_tile_bytes(cols, itemsize) + _HEADROOM_BYTES
    if footprint > hard_cap:
        # e.g. rows not a multiple of 8 and a single full-row block would blow
        # past physical VMEM: compute this (rare) stage in plain XLA instead of
        # failing at compile time.
        return _cwd_stage_loss_xla(s2, t2, scale, tau)
    vmem_limit = min(max(vmem_limit, footprint), hard_cap)

    num_blocks = rows // block_rows
    # Leading "parallel" axis lets v7x's two TensorCores stream disjoint row
    # chunks; on single-TC v5e/v6e it is just an outer loop (harmless).
    num_chunks = 2 if (num_blocks >= 2 and num_blocks % 2 == 0) else 1
    blocks_per_chunk = num_blocks // num_chunks

    kernel = functools.partial(_cwd_kernel, tau=float(tau), scale=float(scale))

    partials = pl.pallas_call(
        kernel,
        out_shape=jax.ShapeDtypeStruct((8 * num_chunks, 128), jnp.float32),
        grid_spec=pltpu.PrefetchScalarGridSpec(
            num_scalar_prefetch=0,
            grid=(num_chunks, blocks_per_chunk),
            in_specs=[
                pl.BlockSpec((block_rows, cols),
                             lambda i, j: (i * blocks_per_chunk + j, 0)),
                pl.BlockSpec((block_rows, cols),
                             lambda i, j: (i * blocks_per_chunk + j, 0)),
            ],
            # (8, 128) lane/sublane-aligned per-chunk accumulator block; every
            # element of a chunk's block carries the same partial value.
            out_specs=pl.BlockSpec((8, 128), lambda i, j: (i, 0)),
        ),
        compiler_params=pltpu.CompilerParams(
            dimension_semantics=("parallel", "arbitrary"),
            vmem_limit_bytes=int(vmem_limit),
        ),
    )(s2, t2)
    # Tiny final reduction over per-chunk partials in plain XLA.
    chunk_vals = partials.reshape(num_chunks, 8, 128)[:, 0, 0]
    return jnp.sum(chunk_vals)


def cwd_loss(y_s, y_t, tau=1.0):
    """Pallas equivalent of CWDLoss.forward: sum of per-stage CWD costs."""
    assert len(y_s) == len(y_t)
    # TODO(synk): stages sharing the same H*W and dtype could be concatenated
    # along the row axis into one pallas_call (with a per-row scale input) to
    # amortize per-call launch / pipeline-prologue overhead for tiny stages.
    loss = jnp.float32(0.0)
    for s, t in zip(y_s, y_t):
        assert s.shape == t.shape
        loss = loss + _cwd_stage_loss(s, t, tau)
    return loss


def _cwd_loss_ref(y_s, y_t, tau=1.0):
    """Pure-JAX reference matching the PyTorch forward."""
    loss = jnp.float32(0.0)
    for s, t in zip(y_s, y_t):
        N, C, H, W = s.shape
        tv = t.reshape(-1, H * W).astype(jnp.float32) / tau
        sv = s.reshape(-1, H * W).astype(jnp.float32) / tau
        sm_t = jax.nn.softmax(tv, axis=1)
        cost = jnp.sum(sm_t * (jax.nn.log_softmax(tv, axis=1)
                               - jax.nn.log_softmax(sv, axis=1))) * tau ** 2
        loss = loss + cost / (C * N)
    return loss


if __name__ == "__main__":
    key = jax.random.PRNGKey(0)
    ks = jax.random.split(key, 10)

    # Small YOLO-like stages: f32, bf16 (exercises reduced-byte DMA path) and
    # an irregular stage with rows % 8 != 0 (full-extent block path).
    y_s = [
        jax.random.normal(ks[0], (2, 4, 16, 16), dtype=jnp.float32),
        jax.random.normal(ks[1], (2, 8, 8, 8), dtype=jnp.float32),
        jax.random.normal(ks[2], (2, 8, 16, 16), dtype=jnp.float32).astype(jnp.bfloat16),
        jax.random.normal(ks[3], (1, 3, 16, 16), dtype=jnp.float32),
    ]
    y_t = [
        jax.random.normal(ks[4], (2, 4, 16, 16), dtype=jnp.float32),
        jax.random.normal(ks[5], (2, 8, 8, 8), dtype=jnp.float32),
        jax.random.normal(ks[6], (2, 8, 16, 16), dtype=jnp.float32).astype(jnp.bfloat16),
        jax.random.normal(ks[7], (1, 3, 16, 16), dtype=jnp.float32),
    ]

    for tau in (1.0, 2.0):  # exercises both the skip-scaling and *1/tau paths
        out = jax.block_until_ready(cwd_loss(y_s, y_t, tau=tau))
        ref = jax.block_until_ready(_cwd_loss_ref(y_s, y_t, tau=tau))
        assert jnp.allclose(out, ref, rtol=1e-2, atol=1e-3), (tau, out, ref)

    # Exercise the multi-block / two-chunk ("parallel" x "arbitrary") path by
    # forcing a tiny tile budget on a slightly bigger stage.
    s_big = jax.random.normal(ks[8], (2, 32, 16, 16), dtype=jnp.float32)
    t_big = jax.random.normal(ks[9], (2, 32, 16, 16), dtype=jnp.float32)
    out_big = jax.block_until_ready(
        _cwd_stage_loss(s_big, t_big, 1.0, tile_budget_bytes=64 * 1024))
    ref_big = jax.block_until_ready(_cwd_loss_ref([s_big], [t_big], tau=1.0))
    assert jnp.allclose(out_big, ref_big, rtol=1e-2, atol=1e-3), (out_big, ref_big)

    print("KERNEL_OK")
</pallas_src>

<mosaic_0001>
module attributes {stable_mosaic.version = 11 : i64} {
  func.func @_cwd_kernel(%arg0: i32, %arg1: i32, %arg2: memref<8x256xf32, #tpu.memory_space<vmem>>, %arg3: memref<8x256xf32, #tpu.memory_space<vmem>>, %arg4: memref<8x128xf32, #tpu.memory_space<vmem>>) attributes {dimension_semantics = [#tpu.dimension_semantics<parallel>, #tpu.dimension_semantics<arbitrary>], iteration_bounds = array<i64: 1, 1>, scalar_prefetch = 0 : i64, scratch_operands = 0 : i64, tpu.core_type = #tpu.core_type<tc>, window_params = [{transform_indices = @transform_0, window_bounds = array<i64: 8, 256>}, {transform_indices = @transform_1, window_bounds = array<i64: 8, 256>}, {transform_indices = @transform_2, window_bounds = array<i64: 8, 128>}]} {
    %c0_i32 = arith.constant 0 : i32
    %0 = arith.cmpi eq, %arg1, %c0_i32 : i32
    %1 = arith.extui %0 : i1 to i32
    %c0_i32_0 = arith.constant 0 : i32
    %2 = arith.cmpi ne, %1, %c0_i32_0 : i32
    scf.if %2 {
      %cst_14 = arith.constant 0.000000e+00 : f32
      %39 = vector.broadcast %cst_14 : f32 to vector<8x128xf32>
      %c0_15 = arith.constant 0 : index
      %c0_16 = arith.constant 0 : index
      %40 = vector.load %arg4[%c0_15, %c0_16] : memref<8x128xf32, #tpu.memory_space<vmem>>, vector<8x128xf32>
      tpu.vector_store %arg4[%c0_15, %c0_16], %39 {strides = array<i32>} : memref<8x128xf32, #tpu.memory_space<vmem>>, vector<8x128xf32>,
    } else {
    }
    %c0 = arith.constant 0 : index
    %c0_1 = arith.constant 0 : index
    %3 = vector.load %arg3[%c0, %c0_1] : memref<8x256xf32, #tpu.memory_space<vmem>>, vector<8x256xf32>
    %c0_2 = arith.constant 0 : index
    %c0_3 = arith.constant 0 : index
    %4 = vector.load %arg2[%c0_2, %c0_3] : memref<8x256xf32, #tpu.memory_space<vmem>>, vector<8x256xf32>
    %cst = arith.constant dense<0xFF800000> : vector<8xf32>
    %5 = vector.multi_reduction <maximumf>, %3, %cst [1] : vector<8x256xf32> to vector<8xf32>
    %6 = vector.shape_cast %5 : vector<8xf32> to vector<8x1xf32>
    %7 = vector.broadcast %6 : vector<8x1xf32> to vector<8x256xf32>
    %8 = arith.subf %3, %7 : vector<8x256xf32>
    %9 = math.exp %8 : vector<8x256xf32>
    %cst_4 = arith.constant dense<0.000000e+00> : vector<8xf32>
    %10 = vector.multi_reduction <add>, %9, %cst_4 [1] : vector<8x256xf32> to vector<8xf32>
    %11 = vector.shape_cast %10 : vector<8xf32> to vector<8x1xf32>
    %cst_5 = arith.constant dense<0xFF800000> : vector<8xf32>
    %12 = vector.multi_reduction <maximumf>, %4, %cst_5 [1] : vector<8x256xf32> to vector<8xf32>
    %13 = vector.shape_cast %12 : vector<8xf32> to vector<8x1xf32>
    %14 = vector.broadcast %13 : vector<8x1xf32> to vector<8x256xf32>
    %15 = arith.subf %4, %14 : vector<8x256xf32>
    %16 = math.exp %15 : vector<8x256xf32>
    %cst_6 = arith.constant dense<0.000000e+00> : vector<8xf32>
    %17 = vector.multi_reduction <add>, %16, %cst_6 [1] : vector<8x256xf32> to vector<8xf32>
    %18 = vector.shape_cast %17 : vector<8xf32> to vector<8x1xf32>
    %19 = arith.subf %8, %15 : vector<8x256xf32>
    %20 = math.log %18 : vector<8x1xf32>
    %21 = math.log %11 : vector<8x1xf32>
    %22 = arith.subf %20, %21 : vector<8x1xf32>
    %23 = vector.broadcast %22 : vector<8x1xf32> to vector<8x256xf32>
    %24 = arith.addf %19, %23 : vector<8x256xf32>
    %25 = arith.mulf %9, %24 : vector<8x256xf32>
    %cst_7 = arith.constant dense<0.000000e+00> : vector<8xf32>
    %26 = vector.multi_reduction <add>, %25, %cst_7 [1] : vector<8x256xf32> to vector<8xf32>
    %27 = vector.shape_cast %26 : vector<8xf32> to vector<8x1xf32>
    %28 = tpu.reciprocal %11 {approx = true} : vector<8x1xf32> -> vector<8x1xf32>
    %29 = arith.mulf %27, %28 : vector<8x1xf32>
    %c0_8 = arith.constant 0 : index
    %c0_9 = arith.constant 0 : index
    %30 = vector.load %arg4[%c0_8, %c0_9] : memref<8x128xf32, #tpu.memory_space<vmem>>, vector<8x128xf32>
    %31 = vector.shape_cast %29 : vector<8x1xf32> to vector<1x8x1xf32>
    %cst_10 = arith.constant dense<0.000000e+00> : vector<1xf32>
    %32 = vector.multi_reduction <add>, %31, %cst_10 [1, 2] : vector<1x8x1xf32> to vector<1xf32>
    %33 = vector.shape_cast %32 : vector<1xf32> to vector<1x1x1xf32>
    %34 = vector.extract %33[0, 0, 0] : f32 from vector<1x1x1xf32>
    %cst_11 = arith.constant 1.250000e-01 : f32
    %35 = arith.mulf %34, %cst_11 : f32
    %36 = vector.broadcast %35 : f32 to vector<8x128xf32>
    %37 = arith.addf %30, %36 : vector<8x128xf32>
    %c0_12 = arith.constant 0 : index
    %c0_13 = arith.constant 0 : index
    %38 = vector.load %arg4[%c0_12, %c0_13] : memref<8x128xf32, #tpu.memory_space<vmem>>, vector<8x128xf32>
    tpu.vector_store %arg4[%c0_12, %c0_13], %37 {strides = array<i32>} : memref<8x128xf32, #tpu.memory_space<vmem>>, vector<8x128xf32>,
    return
  }
  func.func @transform_0(%arg0: i32, %arg1: i32) -> (i32, i32) {
    %c1_i32 = arith.constant 1 : i32
    %0 = arith.muli %arg0, %c1_i32 : i32
    %1 = arith.addi %0, %arg1 : i32
    %c0_i32 = arith.constant 0 : i32
    %c0_i32_0 = arith.constant 0 : i32
    return %1, %c0_i32 : i32, i32
  }
  func.func @transform_1(%arg0: i32, %arg1: i32) -> (i32, i32) {
    %c1_i32 = arith.constant 1 : i32
    %0 = arith.muli %arg0, %c1_i32 : i32
    %1 = arith.addi %0, %arg1 : i32
    %c0_i32 = arith.constant 0 : i32
    %c0_i32_0 = arith.constant 0 : i32
    return %1, %c0_i32 : i32, i32
  }
  func.func @transform_2(%arg0: i32, %arg1: i32) -> (i32, i32) {
    %c0_i32 = arith.constant 0 : i32
    %c0_i32_0 = arith.constant 0 : i32
    return %arg0, %c0_i32 : i32, i32
  }
}

</mosaic_0001>

<bundles_post_ra>
// kernel: tpu_custom_call.1
= control target key start
LH: loop header
LB: loop body
LE: loop exit
PB: predicated region body
PF: predicated region fallthrough
CT: control target
= control target key end

     0   :  { %7 = vsyncpa [#allocation3], 0  ;;  %s258_s0 = inlined_call_operand.hbm [shape: f32[8,256], index: 0, kind: input, shape index: {}]   ;;  %s259_s1 = inlined_call_operand.hbm [shape: f32[8,256], index: 1, kind: input, shape index: {}]   ;;  %s260_s2 = inlined_call_operand.hbm [shape: f32[8,128], index: 2, kind: output, shape index: {}]  }
   0x1   :  { %8 = vsyncpa [#allocation6], 0 }
   0x2   :  { %9 = vsyncpa [#allocation4], 0  ;;  %s19_s11 = sshll.u32 %s258_s0, 4  ;;  %s231_s12 = smov [#allocation2]   ;;  %s20_s11 = int_to_ptr.hbm [resolvable:$true] %s19_s11 }
   0x3   :  { %s21_s13 = sshll.u32 %s231_s12, 4  ;;  %s34_s16 = sshll.u32 %s259_s1, 4  ;;  %s22_s13 = int_to_ptr.vmem [resolvable:$true] %s21_s13  ;;  %s35_s16 = int_to_ptr.hbm [resolvable:$true] %s34_s16 }
   0x4   :  { %24 = dma.hbm_to_vmem [thread:$0]  %s20_s11, 256, %s22_s13, [#allocation3]  }
   0x5   :  { %s232_s17 = smov [#allocation5]  }
   0x6   :  { %s36_s18 = sshll.u32 %s232_s17, 4  ;;  %s37_s18 = int_to_ptr.vmem [resolvable:$true] %s36_s18 }
   0x7   :  { %39 = dma.hbm_to_vmem [thread:$0]  %s35_s16, 256, %s37_s18, [#allocation6]  }
   0x8   :  { %225 = dma.done.wait [#allocation3], 256  }
   0x9   :  { %226 = vsyncadd [#allocation3], 4294967040 }
   0xa   :  { %227 = dma.done.wait [#allocation6], 256  }
   0xb   :  { %228 = vsyncadd [#allocation6], 4294967040  ;;  %v55_v0 = vld [vmem:[#allocation5] sm:$0xff]  ;;  %v56_v1 = vld [vmem:[#allocation5 + $0x8] sm:$0xff]  ;;  %vm100_vm0 = vcmask 7168   ;;  %s233_s1 = smov [#allocation7]  }
   0xc   :  { %v59_v2 = vmax.f32 %v55_v0, %v56_v1  ;;  %v57_v3 = vld [vmem:[#allocation2] sm:$0xff]  ;;  %v58_v4 = vld [vmem:[#allocation2 + $0x8] sm:$0xff]  ;;  %s120_s19 = sshll.u32 %s233_s1, 4  ;;  %s122_s23 = sshll.u32 %s260_s2, 4  ;;  %s121_s19 = int_to_ptr.vmem [resolvable:$true] %s120_s19  ;;  %s123_s23 = int_to_ptr.hbm [resolvable:$true] %s122_s23 }
   0xd   :  { %v71_v5 = vmax.f32 %v57_v3, %v58_v4 }
   0xe   :  { %60 = vmax.xlane.f32.xlu0 %v59_v2 }
  0x16   :  { %72 = vmax.xlane.f32.xlu0 %v71_v5 }
  0x81   :  { %v61_v6 = vpop.xlane.xlu0 %60 }
  0x82   :  { %v62_v7 = vsub.f32 %v55_v0, %v61_v6  ;;  %v63_v8 = vsub.f32 %v56_v1, %v61_v6 }
  0x84   :  { %v64_v9 = vmul.f32 1.442695, %v62_v7  ;;  %v66_v10 = vmul.f32 1.442695, %v63_v8 }
  0x86   :  { %139 = vpow2.f32 %v64_v9 }
  0x87   :  { %141 = vpow2.f32 %v66_v10 }
  0x89   :  { %v73_v11 = vpop.xlane.xlu0 %72 }
  0x8a   :  { %v74_v12 = vsub.f32 %v57_v3, %v73_v11  ;;  %v75_v13 = vsub.f32 %v58_v4, %v73_v11 }
  0x8c   :  { %v140_v14 = vpop.eup %139  ;;  %v76_v15 = vmul.f32 1.442695, %v74_v12  ;;  %v78_v16 = vmul.f32 1.442695, %v75_v13  ;;  %v83_v17 = vsub.f32 %v62_v7, %v74_v12  ;;  %v84_v18 = vsub.f32 %v63_v8, %v75_v13 }
  0x8d   :  { %v142_v19 = vpop.eup %141 }
  0x8e   :  { %143 = vpow2.f32 %v76_v15  ;;  %v68_v20 = vadd.f32 %v142_v19, %v140_v14 }
  0x8f   :  { %145 = vpow2.f32 %v78_v16 }
  0x90   :  { %69 = vadd.xlane.f32.xlu1 %v68_v20 }
  0x94   :  { %v144_v21 = vpop.eup %143 }
  0x95   :  { %v146_v22 = vpop.eup %145 }
  0x96   :  { %v80_v23 = vadd.f32 %v146_v22, %v144_v21 }
  0x98   :  { %81 = vadd.xlane.f32.xlu1 %v80_v23 }
 0x103   :  { %v70_v24 = vpop.xlane.xlu1 %69 }
 0x104   :  { %147 = vlog2.f32 %v70_v24 }
 0x10a   :  { %v148_v26 = vpop.eup %147 }
 0x10b   :  { %v82_v25 = vpop.xlane.xlu1 %81  ;;  %v88_v28 = vmul.f32 0.6931472, %v148_v26 }
 0x10c   :  { %149 = vlog2.f32 %v82_v25 }
 0x10d   :  { %151 = vrcp.f32 %v70_v24 }
 0x112   :  { %v150_v27 = vpop.eup %149 }
 0x113   :  { %v86_v29 = vmul.f32 0.6931472, %v150_v27  ;;  %v152_v36 = vpop.eup %151 }
 0x115   :  { %v89_v30 = vsub.f32 %v86_v29, %v88_v28 }
 0x117   :  { %v90_v31 = vadd.f32 %v89_v30, %v83_v17  ;;  %v91_v32 = vadd.f32 %v89_v30, %v84_v18 }
 0x119   :  { %v92_v33 = vmul.f32 %v140_v14, %v90_v31  ;;  %v93_v34 = vmul.f32 %v142_v19, %v91_v32 }
 0x11b   :  { %v94_v35 = vadd.f32 %v93_v34, %v92_v33 }
 0x11d   :  { %95 = vadd.xlane.f32.xlu2 %v94_v35 }
 0x190   :  { %v96_v37 = vpop.xlane.xlu2 %95 }
 0x191   :  { %v98_v38 = vmul.f32 %v152_v36, %v96_v37 }
 0x193   :  { %v101_v39 = vsel %vm100_vm0, %v98_v38, 0.0 }
 0x194   :  { %102 = vadd.xlane.f32.xlu2 %v101_v39 }
 0x207   :  { %v103_v40 = vpop.xlane.xlu2 %102 }
 0x208   :  { %v104_v41 = vrot.slane %v103_v40, 4 }
 0x20a   :  { %v105_v42 = vadd.f32 %v104_v41, %v103_v40 }
 0x20c   :  { %v106_v43 = vrot.slane %v105_v42, 2 }
 0x20e   :  { %v107_v44 = vadd.f32 %v106_v43, %v105_v42 }
 0x210   :  { %v108_v45 = vrot.slane %v107_v44, 1 }
 0x212   :  { %v109_v46 = vadd.f32 %v108_v45, %v107_v44 }
 0x214   :  { %133 = vpush %v109_v46 }
 0x245   :  { %s134_s0 = spop %133 }
 0x246   :  { %s111_s20 = smul.f32 0.125, %s134_s0 }
 0x248   :  { %v112_v47 = vstv %s111_s20 }
 0x249   :  { %114 = vst [vmem:[#allocation7] sm:$0xff] %v112_v47 }
 0x24a   :  { %125 = dma.vmem_to_hbm [thread:$0]  %s121_s19, 128, %s123_s23, [#allocation4]  }
 0x24b   :  { %229 = dma.done.wait [#allocation4], 128  }
 0x24c   :  { %230 = vsyncadd [#allocation4], 4294967168 }
 0x24d   :  { %130 = vsyncpa [#allocation3], 1 }
 0x24e   :  { %131 = vsyncpa [#allocation6], 1 }
 0x24f   :  { %132 = vsyncpa [#allocation4], 1 }

</bundles_post_ra>
